<compile_context>
chip_gen: v5e
topology: v5e:2x2
jax: 0.10.0
libtpu: 0.0.40
codegen_flags: <defaults>
</compile_context>

<pallas_src>
import functools

import jax
import jax.numpy as jnp
import numpy as np
from jax.experimental import pallas as pl
from jax.experimental.pallas import tpu as pltpu


def _group_l1_flow_kernel(xT_ref, g_ref, w0_ref, wh_ref, wout_ref, out_ref, *,
                          num_hidden, node_block, hidden_dim, outdim):
    """Evaluate `node_block` per-node MLPs in one grid step.

    xT_ref   : (Din, B)           f32   shared across all grid steps
    g_ref    : (TD, Din)          wdt   group_l1 rows for this node block
    w0_ref   : (TD, H, Din)       wdt   layer-0 Linear weights (out, in)
    wh_ref   : (TD, NH, H, H)     wdt   hidden Linear weights (out, in), or None
    wout_ref : (TD, H, outdim)    wdt   output Linear stored transposed
    out_ref  : (outdim, TD, B)    f32
    """
    xT = xT_ref[...].astype(jnp.float32)                         # (Din, B)
    din, batch = xT.shape
    g = jnp.maximum(g_ref[...].astype(jnp.float32), 0.0)         # (TD, Din)
    w0 = w0_ref[...].astype(jnp.float32)                         # (TD, H, Din)

    # Fold relu(group_l1) into layer-0 weights in VMEM (no HBM-side copy), then
    # run the whole node block's first layer as ONE matmul vs the shared input.
    w0g = w0 * g[:, None, :]                                     # (TD, H, Din)
    h = jnp.dot(w0g.reshape(node_block * hidden_dim, din), xT,
                preferred_element_type=jnp.float32)              # (TD*H, B)
    h = jnp.maximum(h, 0.0).reshape(node_block, hidden_dim, batch)

    # Hidden layers: per-node matmuls batched over the leading node axis.
    if num_hidden > 0:
        wh = wh_ref[...].astype(jnp.float32)                     # (TD, NH, H, H)
        for l in range(num_hidden):
            h = jax.lax.dot_general(
                wh[:, l], h,
                dimension_numbers=(((2,), (1,)), ((0,), (0,))),
                preferred_element_type=jnp.float32)              # (TD, H, B)
            h = jnp.maximum(h, 0.0)

    # Output layer (outdim <= 2): multiply + reduce over H, store per channel.
    wout = wout_ref[...].astype(jnp.float32)                     # (TD, H, outdim)
    for o in range(outdim):
        yo = jnp.sum(h * wout[:, :, o][:, :, None], axis=1)      # (TD, B)
        out_ref[o] = yo.astype(out_ref.dtype)


def _choose_node_block(num_nodes, stream_per_node, scratch_per_node, fixed,
                       budget):
    """Pick nodes per grid step.

    Constraints: block must be a multiple of 8 or equal the full node axis
    (BlockSpec second-to-last-dim rule for the g / out blocks) and fit VMEM.
    Returns (node_block, needs_padding).
    """
    per_td = 2 * stream_per_node + scratch_per_node   # double-buffered streams

    def cost(td):
        return fixed + td * per_td

    def legal(td):
        return (td % 8 == 0 or td == num_nodes) and cost(td) <= budget

    divisors = [d for d in range(1, num_nodes + 1) if num_nodes % d == 0]
    multi = [d for d in divisors if legal(d) and num_nodes // d >= 2]
    if multi:                       # >=2 grid steps: DMA/compute overlap + megacore
        return max(multi), False
    if legal(num_nodes):
        return num_nodes, False
    # Fallback: no exact divisor works -> pad the node axis with zero nodes.
    td = 8
    while td * 2 < num_nodes and cost(td * 2) <= budget:
        td *= 2
    return td, True


def group_l1_flow_forward(state, params, predict_var, *,
                          weight_dtype=jnp.float32,
                          vmem_budget_bytes=20 * 2**20):
    """Pallas forward of GroupL1FlowModel. state: [B, Din] float32."""
    if not predict_var:
        # Exact PyTorch semantics: `delta` is never written when
        # predict_var=False, so the result is exactly zeros. Skip the kernel.
        return jnp.zeros_like(state)

    g, w0, wh, wout = (params["group_l1"], params["w0"],
                       params["wh"], params["wout"])
    num_hidden = int(params["num_hidden"])
    D, H, Din = w0.shape
    B = state.shape[0]
    outdim = wout.shape[-1]
    assert outdim >= 2, "predict_var=True requires output_dim >= 2"
    assert state.shape[1] == Din and g.shape == (D, Din)

    # ---- VMEM budgeting / node-block choice ------------------------------
    wbytes = jnp.dtype(weight_dtype).itemsize
    stream_per_node = ((Din + H * Din + num_hidden * H * H + H * outdim) * wbytes
                       + B * outdim * 4)
    scratch_per_node = H * Din * 4 + 4 * H * B * 4 + Din * 4   # w0g fold + h temps
    if wbytes < 4:
        scratch_per_node += (H * Din + num_hidden * H * H + H * outdim) * 4
    fixed = 2 * Din * B * 4

    td, need_pad = _choose_node_block(D, stream_per_node, scratch_per_node,
                                      fixed, vmem_budget_bytes)

    # ---- Weight streaming prep (no folding / slicing copies) -------------
    if weight_dtype != w0.dtype:
        g_s, w0_s, wout_s = (g.astype(weight_dtype), w0.astype(weight_dtype),
                             wout.astype(weight_dtype))
        wh_s = wh.astype(weight_dtype) if num_hidden > 0 else wh
    else:
        g_s, w0_s, wh_s, wout_s = g, w0, wh, wout

    D_run = D
    if need_pad:
        D_run = ((D + td - 1) // td) * td
        pad = D_run - D
        g_s = jnp.pad(g_s, ((0, pad), (0, 0)))
        w0_s = jnp.pad(w0_s, ((0, pad), (0, 0), (0, 0)))
        wout_s = jnp.pad(wout_s, ((0, pad), (0, 0), (0, 0)))
        if num_hidden > 0:
            wh_s = jnp.pad(wh_s, ((0, pad), (0, 0), (0, 0), (0, 0)))

    xT = state.T.astype(jnp.float32)                             # (Din, B) shared

    in_specs = [
        pl.BlockSpec((Din, B), lambda n: (0, 0)),                # xT (resident)
        pl.BlockSpec((td, Din), lambda n: (n, 0)),               # group_l1
        pl.BlockSpec((td, H, Din), lambda n: (n, 0, 0)),         # W0
    ]
    inputs = [xT, g_s, w0_s]
    if num_hidden > 0:
        in_specs.append(
            pl.BlockSpec((td, num_hidden, H, H), lambda n: (n, 0, 0, 0)))
        inputs.append(wh_s)
        kernel_inner = _group_l1_flow_kernel
    else:
        def kernel_inner(xT_ref, g_ref, w0_ref, wout_ref, out_ref, **kw):
            _group_l1_flow_kernel(xT_ref, g_ref, w0_ref, None, wout_ref,
                                  out_ref, **kw)
    in_specs.append(pl.BlockSpec((td, H, outdim), lambda n: (n, 0, 0)))
    inputs.append(wout_s)

    kernel = functools.partial(kernel_inner, num_hidden=num_hidden,
                               node_block=td, hidden_dim=H, outdim=outdim)

    per_step = fixed + td * (2 * stream_per_node + scratch_per_node)
    vmem_limit = int(min(max(2 * per_step, 16 * 2**20), 64 * 2**20))

    y = pl.pallas_call(
        kernel,
        out_shape=jax.ShapeDtypeStruct((outdim, D_run, B), state.dtype),
        grid_spec=pltpu.PrefetchScalarGridSpec(
            num_scalar_prefetch=0,
            grid=(D_run // td,),
            in_specs=in_specs,
            out_specs=pl.BlockSpec((outdim, td, B), lambda n: (0, n, 0)),
        ),
        compiler_params=pltpu.CompilerParams(
            dimension_semantics=("parallel",),
            vmem_limit_bytes=vmem_limit),
    )(*inputs)

    if need_pad:
        y = y[:, :D]
    delta = y[0].T                                               # (B, D)
    var = y[1].T                                                 # (B, D)
    return delta, var


def reference_forward(state, params, predict_var):
    """Pure-JAX reference matching the PyTorch module."""
    if not predict_var:
        return jnp.zeros_like(state)
    D = params["w0"].shape[0]
    num_hidden = int(params["num_hidden"])
    deltas, varis = [], []
    for i in range(D):
        g = jnp.maximum(params["group_l1"][i], 0.0)
        h = jnp.maximum(state @ (params["w0"][i] * g[None, :]).T, 0.0)
        for l in range(num_hidden):
            h = jnp.maximum(h @ params["wh"][i, l].T, 0.0)
        y = h @ params["wout"][i]                                # (B, outdim)
        deltas.append(y[:, 0])
        varis.append(y[:, 1])
    return jnp.stack(deltas, axis=1), jnp.stack(varis, axis=1)


def make_params(key, input_dim, hidden_dim, num_layers, outdim):
    num_hidden = num_layers - 1
    k0, k1, k2, k3 = jax.random.split(key, 4)
    s0 = 1.0 / np.sqrt(input_dim)
    sh = 1.0 / np.sqrt(hidden_dim)
    return {
        # PyTorch inits group_l1 to ones; random values here also exercise relu.
        "group_l1": jax.random.normal(k0, (input_dim, input_dim), jnp.float32),
        "w0": s0 * jax.random.normal(
            k1, (input_dim, hidden_dim, input_dim), jnp.float32),
        "wh": sh * jax.random.normal(
            k2, (input_dim, num_hidden, hidden_dim, hidden_dim), jnp.float32),
        "wout": sh * jax.random.normal(
            k3, (input_dim, hidden_dim, outdim), jnp.float32),
        "num_hidden": num_hidden,
    }


if __name__ == "__main__":
    key = jax.random.PRNGKey(0)
    kx, kp1, kp2, kp3 = jax.random.split(key, 4)
    B, input_dim, hidden_dim = 2, 4, 32
    state = jax.random.normal(kx, (B, input_dim), jnp.float32)

    # Case 1: predict_var=True, num_layers=2 (one hidden layer), f32 weights.
    params = make_params(kp1, input_dim, hidden_dim, num_layers=2, outdim=2)
    delta, var = jax.block_until_ready(
        group_l1_flow_forward(state, params, predict_var=True))
    dref, vref = reference_forward(state, params, predict_var=True)
    np.testing.assert_allclose(np.asarray(delta), np.asarray(dref),
                               rtol=1e-5, atol=1e-5)
    np.testing.assert_allclose(np.asarray(var), np.asarray(vref),
                               rtol=1e-5, atol=1e-5)

    # bf16 weight streaming (halves HBM weight traffic); math stays f32.
    dbf, vbf = jax.block_until_ready(
        group_l1_flow_forward(state, params, predict_var=True,
                              weight_dtype=jnp.bfloat16))
    np.testing.assert_allclose(np.asarray(dbf), np.asarray(dref),
                               rtol=1e-1, atol=1e-1)
    np.testing.assert_allclose(np.asarray(vbf), np.asarray(vref),
                               rtol=1e-1, atol=1e-1)

    # Case 2: num_layers=1 (no hidden Linears) -> no-wh kernel variant.
    params1 = make_params(kp2, input_dim, hidden_dim, num_layers=1, outdim=2)
    d1, v1 = jax.block_until_ready(
        group_l1_flow_forward(state, params1, predict_var=True))
    d1r, v1r = reference_forward(state, params1, predict_var=True)
    np.testing.assert_allclose(np.asarray(d1), np.asarray(d1r),
                               rtol=1e-5, atol=1e-5)
    np.testing.assert_allclose(np.asarray(v1), np.asarray(v1r),
                               rtol=1e-5, atol=1e-5)

    # Case 3: 16 nodes, num_layers=3 -> multi-step node-blocked grid (block=8).
    input_dim3 = 16
    state3 = jax.random.normal(kx, (B, input_dim3), jnp.float32)
    params3 = make_params(kp3, input_dim3, hidden_dim, num_layers=3, outdim=2)
    d3, v3 = jax.block_until_ready(
        group_l1_flow_forward(state3, params3, predict_var=True))
    d3r, v3r = reference_forward(state3, params3, predict_var=True)
    np.testing.assert_allclose(np.asarray(d3), np.asarray(d3r),
                               rtol=1e-5, atol=1e-5)
    np.testing.assert_allclose(np.asarray(v3), np.asarray(v3r),
                               rtol=1e-5, atol=1e-5)

    # Case 4: awkward node count (12) + tiny budget -> zero-padded node axis.
    input_dim4 = 12
    state4 = jax.random.normal(kx, (B, input_dim4), jnp.float32)
    params4 = make_params(kp1, input_dim4, hidden_dim, num_layers=2, outdim=2)
    d4, v4 = jax.block_until_ready(
        group_l1_flow_forward(state4, params4, predict_var=True,
                              vmem_budget_bytes=130_000))
    d4r, v4r = reference_forward(state4, params4, predict_var=True)
    np.testing.assert_allclose(np.asarray(d4), np.asarray(d4r),
                               rtol=1e-5, atol=1e-5)
    np.testing.assert_allclose(np.asarray(v4), np.asarray(v4r),
                               rtol=1e-5, atol=1e-5)

    # Case 5: predict_var=False -> PyTorch returns untouched zeros; no kernel.
    params0 = make_params(kp1, input_dim, hidden_dim, num_layers=2, outdim=1)
    z = group_l1_flow_forward(state, params0, predict_var=False)
    assert z.shape == state.shape and float(jnp.abs(z).max()) == 0.0

    print("KERNEL_OK")
</pallas_src>

<mosaic_0001>
module attributes {stable_mosaic.version = 11 : i64} {
  func.func @_group_l1_flow_kernel(%arg0: i32, %arg1: memref<4x2xf32, #tpu.memory_space<vmem>>, %arg2: memref<4x4xf32, #tpu.memory_space<vmem>>, %arg3: memref<4x32x4xf32, #tpu.memory_space<vmem>>, %arg4: memref<4x1x32x32xf32, #tpu.memory_space<vmem>>, %arg5: memref<4x32x2xf32, #tpu.memory_space<vmem>>, %arg6: memref<2x4x2xf32, #tpu.memory_space<vmem>>) attributes {dimension_semantics = [#tpu.dimension_semantics<parallel>], iteration_bounds = array<i64: 1>, scalar_prefetch = 0 : i64, scratch_operands = 0 : i64, tpu.core_type = #tpu.core_type<tc>, window_params = [{pipeline_mode = #tpu.pipeline_mode<synchronous>, transform_indices = @transform_0, window_bounds = array<i64: 4, 2>}, {transform_indices = @transform_1, window_bounds = array<i64: 4, 4>}, {transform_indices = @transform_2, window_bounds = array<i64: 4, 32, 4>}, {transform_indices = @transform_3, window_bounds = array<i64: 4, 1, 32, 32>}, {transform_indices = @transform_4, window_bounds = array<i64: 4, 32, 2>}, {transform_indices = @transform_5, window_bounds = array<i64: 2, 4, 2>}]} {
    %c0 = arith.constant 0 : index
    %c0_0 = arith.constant 0 : index
    %0 = vector.load %arg1[%c0, %c0_0] : memref<4x2xf32, #tpu.memory_space<vmem>>, vector<4x2xf32>
    %c0_1 = arith.constant 0 : index
    %c0_2 = arith.constant 0 : index
    %1 = vector.load %arg2[%c0_1, %c0_2] : memref<4x4xf32, #tpu.memory_space<vmem>>, vector<4x4xf32>
    %cst = arith.constant 0.000000e+00 : f32
    %2 = vector.broadcast %cst : f32 to vector<4x4xf32>
    %3 = arith.maximumf %1, %2 : vector<4x4xf32>
    %c0_3 = arith.constant 0 : index
    %c0_4 = arith.constant 0 : index
    %c0_5 = arith.constant 0 : index
    %4 = vector.load %arg3[%c0_3, %c0_4, %c0_5] : memref<4x32x4xf32, #tpu.memory_space<vmem>>, vector<4x32x4xf32>
    %5 = vector.shape_cast %3 : vector<4x4xf32> to vector<4x1x4xf32>
    %6 = vector.broadcast %5 : vector<4x1x4xf32> to vector<4x32x4xf32>
    %7 = arith.mulf %4, %6 : vector<4x32x4xf32>
    %8 = vector.shape_cast %7 : vector<4x32x4xf32> to vector<128x4xf32>
    %cst_6 = arith.constant dense<0.000000e+00> : vector<128x2xf32>
    %9 = tpu.matmul %8, %0, %cst_6 {dimension_numbers = #tpu.dot_dimension_numbers<[1], [0], [0], [1], [0, 0, 1, 1], [], []>} : vector<128x4xf32>, vector<4x2xf32>, vector<128x2xf32> -> vector<128x2xf32>
    %cst_7 = arith.constant 0.000000e+00 : f32
    %10 = vector.broadcast %cst_7 : f32 to vector<128x2xf32>
    %11 = arith.maximumf %9, %10 : vector<128x2xf32>
    %12 = vector.shape_cast %11 : vector<128x2xf32> to vector<4x32x2xf32>
    %c0_8 = arith.constant 0 : index
    %c0_9 = arith.constant 0 : index
    %c0_10 = arith.constant 0 : index
    %c0_11 = arith.constant 0 : index
    %13 = vector.load %arg4[%c0_8, %c0_9, %c0_10, %c0_11] : memref<4x1x32x32xf32, #tpu.memory_space<vmem>>, vector<4x1x32x32xf32>
    %14 = vector.shape_cast %13 : vector<4x1x32x32xf32> to vector<4x32x32xf32>
    %cst_12 = arith.constant dense<0.000000e+00> : vector<4x32x2xf32>
    %15 = tpu.matmul %14, %12, %cst_12 {dimension_numbers = #tpu.dot_dimension_numbers<[2], [1], [1], [2], [0, 0, 0, 1, 1, 2], [0], [0]>} : vector<4x32x32xf32>, vector<4x32x2xf32>, vector<4x32x2xf32> -> vector<4x32x2xf32>
    %cst_13 = arith.constant 0.000000e+00 : f32
    %16 = vector.broadcast %cst_13 : f32 to vector<4x32x2xf32>
    %17 = arith.maximumf %15, %16 : vector<4x32x2xf32>
    %c0_14 = arith.constant 0 : index
    %c0_15 = arith.constant 0 : index
    %c0_16 = arith.constant 0 : index
    %18 = vector.load %arg5[%c0_14, %c0_15, %c0_16] : memref<4x32x2xf32, #tpu.memory_space<vmem>>, vector<4x32x2xf32>
    %19 = vector.extract_strided_slice %18 {offsets = [0, 0, 0], sizes = [4, 32, 1], strides = [1, 1, 1]} : vector<4x32x2xf32> to vector<4x32x1xf32>
    %20 = vector.shape_cast %19 : vector<4x32x1xf32> to vector<4x32xf32>
    %21 = vector.shape_cast %20 : vector<4x32xf32> to vector<4x32x1xf32>
    %22 = vector.broadcast %21 : vector<4x32x1xf32> to vector<4x32x2xf32>
    %23 = arith.mulf %17, %22 : vector<4x32x2xf32>
    %cst_17 = arith.constant dense<0.000000e+00> : vector<4x2xf32>
    %24 = vector.multi_reduction <add>, %23, %cst_17 [1] : vector<4x32x2xf32> to vector<4x2xf32>
    %c0_18 = arith.constant 0 : index
    %c0_19 = arith.constant 0 : index
    %c0_20 = arith.constant 0 : index
    %25 = vector.load %arg6[%c0_18, %c0_19, %c0_20] : memref<2x4x2xf32, #tpu.memory_space<vmem>>, vector<1x4x2xf32>
    %26 = vector.shape_cast %25 : vector<1x4x2xf32> to vector<4x2xf32>
    %27 = vector.shape_cast %24 : vector<4x2xf32> to vector<1x4x2xf32>
    tpu.vector_store %arg6[%c0_18, %c0_19, %c0_20], %27 {strides = array<i32>} : memref<2x4x2xf32, #tpu.memory_space<vmem>>, vector<1x4x2xf32>,
    %28 = vector.extract_strided_slice %18 {offsets = [0, 0, 1], sizes = [4, 32, 1], strides = [1, 1, 1]} : vector<4x32x2xf32> to vector<4x32x1xf32>
    %29 = vector.shape_cast %28 : vector<4x32x1xf32> to vector<4x32xf32>
    %30 = vector.shape_cast %29 : vector<4x32xf32> to vector<4x32x1xf32>
    %31 = vector.broadcast %30 : vector<4x32x1xf32> to vector<4x32x2xf32>
    %32 = arith.mulf %17, %31 : vector<4x32x2xf32>
    %cst_21 = arith.constant dense<0.000000e+00> : vector<4x2xf32>
    %33 = vector.multi_reduction <add>, %32, %cst_21 [1] : vector<4x32x2xf32> to vector<4x2xf32>
    %c1 = arith.constant 1 : index
    %c0_22 = arith.constant 0 : index
    %c0_23 = arith.constant 0 : index
    %34 = vector.load %arg6[%c1, %c0_22, %c0_23] : memref<2x4x2xf32, #tpu.memory_space<vmem>>, vector<1x4x2xf32>
    %35 = vector.shape_cast %34 : vector<1x4x2xf32> to vector<4x2xf32>
    %36 = vector.shape_cast %33 : vector<4x2xf32> to vector<1x4x2xf32>
    tpu.vector_store %arg6[%c1, %c0_22, %c0_23], %36 {strides = array<i32>} : memref<2x4x2xf32, #tpu.memory_space<vmem>>, vector<1x4x2xf32>,
    return
  }
  func.func @transform_0(%arg0: i32) -> (i32, i32) {
    %c0_i32 = arith.constant 0 : i32
    %c0_i32_0 = arith.constant 0 : i32
    %c0_i32_1 = arith.constant 0 : i32
    return %c0_i32, %c0_i32_0 : i32, i32
  }
  func.func @transform_1(%arg0: i32) -> (i32, i32) {
    %c0_i32 = arith.constant 0 : i32
    %c0_i32_0 = arith.constant 0 : i32
    return %arg0, %c0_i32 : i32, i32
  }
  func.func @transform_2(%arg0: i32) -> (i32, i32, i32) {
    %c0_i32 = arith.constant 0 : i32
    %c0_i32_0 = arith.constant 0 : i32
    %c0_i32_1 = arith.constant 0 : i32
    return %arg0, %c0_i32, %c0_i32_0 : i32, i32, i32
  }
  func.func @transform_3(%arg0: i32) -> (i32, i32, i32, i32) {
    %c0_i32 = arith.constant 0 : i32
    %c0_i32_0 = arith.constant 0 : i32
    %c0_i32_1 = arith.constant 0 : i32
    %c0_i32_2 = arith.constant 0 : i32
    return %arg0, %c0_i32, %c0_i32_0, %c0_i32_1 : i32, i32, i32, i32
  }
  func.func @transform_4(%arg0: i32) -> (i32, i32, i32) {
    %c0_i32 = arith.constant 0 : i32
    %c0_i32_0 = arith.constant 0 : i32
    %c0_i32_1 = arith.constant 0 : i32
    return %arg0, %c0_i32, %c0_i32_0 : i32, i32, i32
  }
  func.func @transform_5(%arg0: i32) -> (i32, i32, i32) {
    %c0_i32 = arith.constant 0 : i32
    %c0_i32_0 = arith.constant 0 : i32
    %c0_i32_1 = arith.constant 0 : i32
    return %c0_i32, %arg0, %c0_i32_0 : i32, i32, i32
  }
}

</mosaic_0001>

<bundles_post_ra>
// kernel: tpu_custom_call.1
= control target key start
LH: loop header
LB: loop body
LE: loop exit
PB: predicated region body
PF: predicated region fallthrough
CT: control target
= control target key end

     0   :  { %vm116_vm0 = vcmask 1043456   ;;  %vm67_vm1 = vcmask 31744   ;;  %v769_v42 = vmov 0   ;;  %v770_v60 = vmov 1   ;;  %s1105_s0 = inlined_call_operand.vmem [shape: f32[4,2], index: 0, kind: input, shape index: {}]   ;;  %s1106_s1 = inlined_call_operand.vmem [shape: f32[4,4], index: 1, kind: input, shape index: {}]   ;;  %s1107_s2 = inlined_call_operand.vmem [shape: f32[4,32,4], index: 2, kind: input, shape index: {}]   ;;  %s1108_s4 = inlined_call_operand.vmem [shape: f32[4,32,2], index: 4, kind: input, shape index: {}]   ;;  %s1109_s3 = inlined_call_operand.vmem [shape: f32[4,1,32,32], index: 3, kind: input, shape index: {}]   ;;  %s1110_s5 = inlined_call_operand.vmem [shape: f32[2,4,2], index: 5, kind: output, shape index: {}]  }
   0x1   :  { %v20_v0 = vld [vmem:[%s1105_s0] sm:$0xf]  ;;  %v32_v6 = vld [vmem:[%s1107_s2 + $0x48] sm:$0xff]  ;;  %v33_v11 = vld [vmem:[%s1107_s2 + $0x50] sm:$0xff]  ;;  %764 = vset.pattern.permute.xlu1 %v769_v42  ;;  %763 = vset.pattern.permute.xlu0 %v769_v42  ;;  %vm217_vm2 = vcmask 261120   ;;  %vm510_vm3 = vcmask 15360  }
   0x2   :  { %v21_v1 = vld [vmem:[%s1106_s1] sm:$0xf]  ;;  %722 = vmatpush.msk.msra.mxu0 %vm116_vm0, %v20_v0  ;;  %756 = vmatpush.msk.msra.mxu2 %vm116_vm0, %v20_v0  ;;  %v24_v10 = vld [vmem:[%s1107_s2 + $0x8] sm:$0xff]  ;;  %v25_v14 = vld [vmem:[%s1107_s2 + $0x10] sm:$0xff]  ;;  %vm567_vm4 = vcmask 1041409   ;;  %vm569_vm5 = vcmask 1042434  }
   0x3   :  { %v22_v2 = vmax.f32 %v21_v1, 0.0  ;;  %v23_v3 = vld [vmem:[%s1107_s2] sm:$0xff]  ;;  %v34_v15 = vld [vmem:[%s1107_s2 + $0x58] sm:$0xff]  ;;  %v36_v27 = vld [vmem:[%s1107_s2 + $0x68] sm:$0xff]  ;;  %765 = vset.pattern.permute.xlu2 %v769_v42  ;;  %vm571_vm6 = vcmask 1043459   ;;  %vm574_vm7 = vcmask 11264  }
   0x4   :  { %v26_v19 = vld [vmem:[%s1107_s2 + $0x18] sm:$0xff]  ;;  %v35_v21 = vld [vmem:[%s1107_s2 + $0x60] sm:$0xff]  ;;  %v28_v30 = vld [vmem:[%s1107_s2 + $0x28] sm:$0xff] }
   0x5   :  { %v43_v4 = vperm.slane %v22_v2, 0  ;;  %v41_v5 = vrot.slane %v22_v2, 2  ;;  %v42_v18 = vrot.slane %v22_v2, 3  ;;  %v40_v23 = vrot.slane %v22_v2, 1  ;;  %v27_v26 = vld [vmem:[%s1107_s2 + $0x20] sm:$0xff]  ;;  %v37_v31 = vld [vmem:[%s1107_s2 + $0x70] sm:$0xff] }
   0x6   :  { %v29_v34 = vld [vmem:[%s1107_s2 + $0x30] sm:$0xff]  ;;  %v38_v35 = vld [vmem:[%s1107_s2 + $0x78] sm:$0xff]  ;;  %v31_v40 = vld [vmem:[%s1107_s2 + $0x40] sm:$0xff] }
   0x7   :  { %v51_v7 = vmul.f32 %v43_v4, %v23_v3  ;;  %v45_v8 = vperm.slane %v41_v5, 0  ;;  %v52_v12 = vmul.f32 %v43_v4, %v24_v10  ;;  %v53_v16 = vmul.f32 %v43_v4, %v25_v14  ;;  %v30_v38 = vld [vmem:[%s1107_s2 + $0x38] sm:$0xff]  ;;  %v400_v43 = vld [vmem:[%s1108_s4 + $0x10] sm:$0xff]  ;;  %v398_v44 = vld [vmem:[%s1108_s4] sm:$0xff] }
   0x8   :  { %v46_v20 = vperm.slane %v42_v18, 0  ;;  %v54_v22 = vmul.f32 %v43_v4, %v26_v19  ;;  %v44_v25 = vperm.slane %v40_v23, 0  ;;  %426 = vperm.xlu1 %764, %v400_v43   ;;  %416 = vperm.xlu0 %763, %v398_v44   ;;  %v401_v45 = vld [vmem:[%s1108_s4 + $0x18] sm:$0xff]  ;;  %v883_v46 = vld [vmem:[%s1108_s4 + $0x8] sm:$0xff]  ;;  %v404_v49 = vld [vmem:[%s1108_s4 + $0x30] sm:$0xff] }
   0x9   :  { %723 = vmatmul.msk.f32.vlgmr.msra.gmra.mxu0 %vm67_vm1, %v51_v7  ;;  %v60_v9 = vmul.f32 %v45_v8, %v32_v6  ;;  %v61_v13 = vmul.f32 %v45_v8, %v33_v11  ;;  %v62_v17 = vmul.f32 %v45_v8, %v34_v15  ;;  %v59_v41 = vmul.f32 %v45_v8, %v31_v40  ;;  %v889_v47 = vld [vmem:[%s1108_s4 + $0x38] sm:$0xff]  ;;  %v408_v50 = vld [vmem:[%s1108_s4 + $0x50] sm:$0xff]  ;;  %v402_v51 = vld [vmem:[%s1108_s4 + $0x20] sm:$0xff] }
   0xa   :  { %v63_v24 = vmul.f32 %v46_v20, %v35_v21  ;;  %v55_v28 = vmul.f32 %v44_v25, %v27_v26  ;;  %v64_v29 = vmul.f32 %v46_v20, %v36_v27  ;;  %v56_v32 = vmul.f32 %v44_v25, %v28_v30  ;;  %436 = vperm.xlu2 %765, %v402_v51   ;;  %v407_v54 = vld [vmem:[%s1108_s4 + $0x48] sm:$0xff]  ;;  %v917_v59 = vld [vmem:[%s1108_s4 + $0x60] sm:$0xff]  ;;  %v931_v2 = vld [vmem:[%s1108_s4 + $0x78] sm:$0xff] }
   0xb   :  { %732 = vmatmul.msk.f32.vlgmr.msra.gmra.mxu2 %vm67_vm1, %v60_v9  ;;  %v65_v33 = vmul.f32 %v46_v20, %v37_v31  ;;  %v57_v36 = vmul.f32 %v44_v25, %v29_v34  ;;  %v66_v37 = vmul.f32 %v46_v20, %v38_v35  ;;  %v58_v39 = vmul.f32 %v44_v25, %v30_v38  ;;  %v411_v55 = vld [vmem:[%s1108_s4 + $0x68] sm:$0xff]  ;;  %v923_v61 = vld [vmem:[%s1108_s4 + $0x40] sm:$0xff]  ;;  %v409_v4 = vld [vmem:[%s1108_s4 + $0x58] sm:$0xff] }
   0xc   :  { %v403_v56 = vld [vmem:[%s1108_s4 + $0x28] sm:$0xff]  ;;  %v201_v6 = vld [vmem:[%s1109_s3] sm:$0xff]  ;;  %v412_v9 = vld [vmem:[%s1108_s4 + $0x70] sm:$0xff] }
   0xd   :  { %v202_v10 = vld [vmem:[%s1109_s3 + $0x8] sm:$0xff]  ;;  %v205_v27 = vld [vmem:[%s1109_s3 + $0x20] sm:$0xff]  ;;  %v207_v35 = vld [vmem:[%s1109_s3 + $0x30] sm:$0xff] }
   0xe   :  { %v215_v38 = vld [vmem:[%s1109_s3 + $0x70] sm:$0xff]  ;;  %v216_v40 = vld [vmem:[%s1109_s3 + $0x78] sm:$0xff] }
   0xf   :  { %v211_v42 = vld [vmem:[%s1109_s3 + $0x50] sm:$0xff] }
  0x10   :  { %431 = vperm.xlu1 %764, %v401_v45   ;;  %421 = vperm.xlu0 %763, %v883_v46  }
  0x11   :  { %724 = vmatmul.msk.f32.gmra.mxu0 %vm67_vm1, %v52_v12 }
  0x12   :  { %441 = vperm.xlu2 %765, %v403_v56  }
  0x13   :  { %733 = vmatmul.msk.f32.gmra.mxu2 %vm67_vm1, %v61_v13  ;;  %v203_v13 = vld [vmem:[%s1109_s3 + $0x10] sm:$0xff] }
  0x18   :  { %451 = vperm.xlu1 %764, %v889_v47   ;;  %446 = vperm.xlu0 %763, %v404_v49  }
  0x19   :  { %725 = vmatmul.msk.f32.gmra.mxu0 %vm67_vm1, %v53_v16  ;;  %v204_v16 = vld [vmem:[%s1109_s3 + $0x18] sm:$0xff] }
  0x1a   :  { %456 = vperm.xlu2 %765, %v923_v61  }
  0x1b   :  { %734 = vmatmul.msk.f32.gmra.mxu2 %vm67_vm1, %v62_v17 }
  0x20   :  { %466 = vperm.xlu1 %764, %v408_v50   ;;  %461 = vperm.xlu0 %763, %v407_v54  }
  0x21   :  { %726 = vmatmul.msk.f32.gmra.mxu0 %vm67_vm1, %v54_v22 }
  0x22   :  { %471 = vperm.xlu2 %765, %v409_v4  }
  0x23   :  { %735 = vmatmul.msk.f32.gmra.mxu2 %vm67_vm1, %v63_v24 }
  0x28   :  { %481 = vperm.xlu1 %764, %v411_v55   ;;  %476 = vperm.xlu0 %763, %v917_v59  }
  0x29   :  { %727 = vmatmul.msk.f32.gmra.mxu0 %vm67_vm1, %v55_v28  ;;  %v206_v28 = vld [vmem:[%s1109_s3 + $0x28] sm:$0xff] }
  0x2a   :  { %486 = vperm.xlu2 %765, %v412_v9  }
  0x2b   :  { %736 = vmatmul.msk.f32.gmra.mxu2 %vm67_vm1, %v64_v29  ;;  %v213_v29 = vld [vmem:[%s1109_s3 + $0x60] sm:$0xff] }
  0x30   :  { %766 = vset.pattern.permute.xlu1 %v770_v60  ;;  %491 = vperm.xlu0 %763, %v931_v2  }
  0x31   :  { %728 = vmatmul.msk.f32.gmra.mxu0 %vm67_vm1, %v56_v32  ;;  %577 = vperm.xlu1 %766, %v398_v44  }
  0x32   :  { %767 = vset.pattern.permute.xlu2 %v770_v60 }
  0x33   :  { %737 = vmatmul.msk.f32.gmra.mxu2 %vm67_vm1, %v65_v33  ;;  %581 = vperm.xlu2 %767, %v883_v46  }
  0x38   :  { %768 = vset.pattern.permute.xlu0 %v770_v60 }
  0x39   :  { %729 = vmatmul.msk.f32.gmra.mxu0 %vm67_vm1, %v57_v36  ;;  %589 = vperm.xlu1 %766, %v401_v45   ;;  %v214_v36 = vld [vmem:[%s1109_s3 + $0x68] sm:$0xff] }
  0x3a   :  { %585 = vperm.xlu0 %768, %v400_v43   ;;  %v212_v43 = vld [vmem:[%s1109_s3 + $0x58] sm:$0xff] }
  0x3b   :  { %738 = vmatmul.msk.f32.gmra.mxu2 %vm67_vm1, %v66_v37  ;;  %593 = vperm.xlu2 %767, %v402_v51   ;;  %v208_v37 = vld [vmem:[%s1109_s3 + $0x38] sm:$0xff] }
  0x41   :  { %730 = vmatmul.msk.f32.gmra.mxu0 %vm67_vm1, %v58_v39  ;;  %597 = vperm.xlu1 %766, %v403_v56   ;;  %v209_v39 = vld [vmem:[%s1109_s3 + $0x40] sm:$0xff] }
  0x42   :  { %613 = vperm.xlu0 %768, %v407_v54  }
  0x43   :  { %609 = vperm.xlu2 %767, %v923_v61  }
  0x49   :  { %731 = vmatmul.msk.f32.gmra.mxu0 %vm67_vm1, %v59_v41  ;;  %601 = vperm.xlu1 %766, %v404_v49   ;;  %v210_v41 = vld [vmem:[%s1109_s3 + $0x48] sm:$0xff] }
  0x4a   :  { %629 = vperm.xlu0 %768, %v411_v55  }
  0x4b   :  { %625 = vperm.xlu2 %767, %v917_v59  }
  0x51   :  { %617 = vperm.xlu1 %766, %v408_v50  }
  0x52   :  { %633 = vperm.xlu0 %768, %v412_v9  }
  0x53   :  { %605 = vperm.xlu2 %767, %v889_v47  }
  0x59   :  { %621 = vperm.xlu1 %766, %v409_v4  }
  0x5b   :  { %637 = vperm.xlu2 %767, %v931_v2  }
  0x64   :  { %v437_v44 = vpop.permute.xlu2 %436 }
  0x6c   :  { %v442_v46 = vpop.permute.xlu2 %441 }
  0x74   :  { %v1012_v49 = vpop.permute.xlu2 %456 }
  0x7a   :  { %v417_v45 = vpop.permute.xlu0 %416  ;;  %v427_v47 = vpop.permute.xlu1 %426 }
  0x82   :  { %v432_v50 = vpop.permute.xlu1 %431 }
  0x86   :  { %v137_v48 = vpop.f32.mrf.mxu0 }
  0x87   :  { %v185_v5 = vmax.f32 %v137_v48, 0.0  ;;  %v422_v48 = vpop.permute.xlu0 %421 }
  0x8a   :  { %v452_v54 = vpop.permute.xlu1 %451 }
  0x8e   :  { %v140_v52 = vpop.f32.mrf.mxu0  ;;  %v901_v53 = vpop.f32.mrf.mxu2 }
  0x8f   :  { %v186_v3 = vmax.f32 %v140_v52, 0.0  ;;  %v194_v33 = vmax.f32 %v901_v53, 0.0  ;;  %v447_v52 = vpop.permute.xlu0 %446  ;;  %v1014_v53 = vpop.permute.xlu2 %471 }
  0x92   :  { %v1022_v61 = vpop.permute.xlu1 %466 }
  0x96   :  { %v143_v57 = vpop.f32.mrf.mxu0  ;;  %v912_v58 = vpop.f32.mrf.mxu2 }
  0x97   :  { %v187_v1 = vmax.f32 %v143_v57, 0.0  ;;  %v195_v32 = vmax.f32 %v912_v58, 0.0  ;;  %v1016_v56 = vpop.permute.xlu0 %461  ;;  %v1018_v57 = vpop.permute.xlu2 %486 }
  0x9e   :  { %v146_v62 = vpop.f32.mrf.mxu0  ;;  %v926_v63 = vpop.f32.mrf.mxu2 }
  0x9f   :  { %v188_v0 = vmax.f32 %v146_v62, 0.0  ;;  %v196_v30 = vmax.f32 %v926_v63, 0.0  ;;  %v1027_v2 = vpop.permute.xlu0 %476 }
  0xa1   :  { %242 = vmatpush.msra.mxu1 %v188_v0 }
  0xa3   :  { %243 = vmatpush.msra.mxu1 %v187_v1 }
  0xa5   :  { %244 = vmatpush.msra.mxu1 %v186_v3 }
  0xa6   :  { %v149_v7 = vpop.f32.mrf.mxu0  ;;  %v173_v8 = vpop.f32.mrf.mxu2 }
  0xa7   :  { %245 = vmatpush.msra.mxu1 %v185_v5  ;;  %v197_v25 = vmax.f32 %v173_v8, 0.0  ;;  %v189_v26 = vmax.f32 %v149_v7, 0.0  ;;  %v582_v5 = vpop.permute.xlu2 %581 }
  0xa8   :  { %739 = vmatmul.msk.f32.vlgmr.msra.gmra.mxu1 %vm217_vm2, %v201_v6 }
  0xae   :  { %v152_v11 = vpop.f32.mrf.mxu0  ;;  %v176_v12 = vpop.f32.mrf.mxu2 }
  0xaf   :  { %v198_v23 = vmax.f32 %v176_v12, 0.0  ;;  %v190_v24 = vmax.f32 %v152_v11, 0.0 }
  0xb0   :  { %740 = vmatmul.msk.f32.gmra.mxu1 %vm217_vm2, %v202_v10  ;;  %v1035_v10 = vpop.permute.xlu1 %481 }
  0xb6   :  { %v155_v14 = vpop.f32.mrf.mxu0  ;;  %v179_v15 = vpop.f32.mrf.mxu2 }
  0xb7   :  { %v199_v21 = vmax.f32 %v179_v15, 0.0  ;;  %v191_v22 = vmax.f32 %v155_v14, 0.0  ;;  %v1040_v15 = vpop.permute.xlu0 %491 }
  0xb8   :  { %741 = vmatmul.msk.f32.gmra.mxu1 %vm217_vm2, %v203_v13 }
  0xbe   :  { %v158_v17 = vpop.f32.mrf.mxu0  ;;  %v182_v18 = vpop.f32.mrf.mxu2 }
  0xbf   :  { %v192_v19 = vmax.f32 %v158_v17, 0.0  ;;  %v200_v20 = vmax.f32 %v182_v18, 0.0  ;;  %v578_v17 = vpop.permute.xlu1 %577 }
  0xc0   :  { %742 = vmatmul.msk.f32.gmra.mxu1 %vm217_vm2, %v204_v16  ;;  %v594_v16 = vpop.permute.xlu2 %593 }
  0xc1   :  { %283 = vmatpush.msrb.mxu2 %v192_v19  ;;  %757 = vmatpush.msra.mxu3 %v192_v19 }
  0xc2   :  { %365 = vmatpush.msrb.mxu1 %v200_v20  ;;  %v586_v20 = vpop.permute.xlu0 %585 }
  0xc3   :  { %284 = vmatpush.msrb.mxu2 %v191_v22  ;;  %758 = vmatpush.msra.mxu3 %v191_v22 }
  0xc4   :  { %366 = vmatpush.msrb.mxu1 %v199_v21 }
  0xc5   :  { %285 = vmatpush.msrb.mxu2 %v190_v24  ;;  %759 = vmatpush.msra.mxu3 %v190_v24 }
  0xc6   :  { %367 = vmatpush.msrb.mxu1 %v198_v23  ;;  %v161_v31 = vpop.f32.mrf.mxu0 }
  0xc7   :  { %286 = vmatpush.msrb.mxu2 %v189_v26  ;;  %760 = vmatpush.msra.mxu3 %v189_v26  ;;  %v193_v34 = vmax.f32 %v161_v31, 0.0 }
  0xc8   :  { %368 = vmatpush.msrb.mxu1 %v197_v25  ;;  %743 = vmatmul.msk.f32.vlgmr.msrb.gmra.mxu2 %vm217_vm2, %v205_v27  ;;  %v1044_v22 = vpop.permute.xlu2 %609  ;;  %v590_v25 = vpop.permute.xlu1 %589 }
  0xc9   :  { %744 = vmatmul.msk.f32.vlgmr.msra.gmra.mxu3 %vm217_vm2, %v206_v28  ;;  %751 = vmatmul.msk.f32.vlgmr.msrb.gmra.mxu1 %vm217_vm2, %v213_v29 }
  0xca   :  { %324 = vmatpush.msrb.mxu3 %v196_v30  ;;  %v1046_v31 = vpop.permute.xlu0 %613 }
  0xcc   :  { %325 = vmatpush.msrb.mxu3 %v195_v32 }
  0xce   :  { %326 = vmatpush.msrb.mxu3 %v194_v33 }
  0xd0   :  { %327 = vmatpush.msrb.mxu3 %v193_v34 }
  0xd1   :  { %745 = vmatmul.msk.f32.gmra.mxu3 %vm217_vm2, %v207_v35  ;;  %752 = vmatmul.msk.f32.gmra.mxu1 %vm217_vm2, %v214_v36  ;;  %v626_v36 = vpop.permute.xlu2 %625 }
  0xd9   :  { %746 = vmatmul.msk.f32.gmra.mxu3 %vm217_vm2, %v208_v37  ;;  %753 = vmatmul.msk.f32.gmra.mxu1 %vm217_vm2, %v215_v38 }
  0xe1   :  { %747 = vmatmul.msk.f32.vlgmr.msrb.gmra.mxu3 %vm217_vm2, %v209_v39  ;;  %754 = vmatmul.msk.f32.gmra.mxu1 %vm217_vm2, %v216_v40 }
  0xe9   :  { %748 = vmatmul.msk.f32.gmra.mxu3 %vm217_vm2, %v210_v41  ;;  %v598_v41 = vpop.permute.xlu1 %597 }
  0xf1   :  { %749 = vmatmul.msk.f32.gmra.mxu3 %vm217_vm2, %v211_v42 }
  0xf9   :  { %750 = vmatmul.msk.f32.gmra.mxu3 %vm217_vm2, %v212_v43 }
 0x125   :  { %v247_v51 = vpop.f32.mrf.mxu1 }
 0x126   :  { %v382_v58 = vmax.f32 %v247_v51, 0.0 }
 0x128   :  { %v494_v63 = vmul.f32 %v417_v45, %v382_v58 }
 0x12a   :  { %v511_v3 = vsel %vm510_vm3, %v494_v63, 0.0 }
 0x12d   :  { %v250_v55 = vpop.f32.mrf.mxu1 }
 0x12e   :  { %v383_v59 = vmax.f32 %v250_v55, 0.0 }
 0x130   :  { %v495_v0 = vmul.f32 %v422_v48, %v383_v59  ;;  %v630_v48 = vpop.permute.xlu0 %629  ;;  %v641_v51 = vmul.f32 %v582_v5, %v383_v59  ;;  %v602_v59 = vpop.permute.xlu1 %601 }
 0x132   :  { %v512_v4 = vsel %vm510_vm3, %v495_v0, 0.0 }
 0x133   :  { %v513_v9 = vadd.f32 %v512_v4, %v511_v3  ;;  %v606_v4 = vpop.permute.xlu2 %605 }
 0x135   :  { %v1020_v60 = vpop.f32.mrf.mxu1 }
 0x136   :  { %v384_v62 = vmax.f32 %v1020_v60, 0.0 }
 0x138   :  { %v496_v1 = vmul.f32 %v427_v47, %v384_v62 }
 0x13a   :  { %v514_v7 = vsel %vm510_vm3, %v496_v1, 0.0 }
 0x13b   :  { %v515_v12 = vadd.f32 %v514_v7, %v513_v9  ;;  %v657_v7 = vsel %vm510_vm3, %v641_v51, 0.0 }
 0x13d   :  { %v1031_v6 = vpop.f32.mrf.mxu1 }
 0x13e   :  { %v385_v8 = vmax.f32 %v1031_v6, 0.0 }
 0x140   :  { %v497_v11 = vmul.f32 %v432_v50, %v385_v8 }
 0x142   :  { %v516_v13 = vsel %vm510_vm3, %v497_v11, 0.0  ;;  %v642_v11 = vmul.f32 %v586_v20, %v384_v62 }
 0x143   :  { %v517_v14 = vadd.f32 %v516_v13, %v515_v12 }
 0x144   :  { %v659_v60 = vsel %vm510_vm3, %v642_v11, 0.0 }
 0x145   :  { %v518_v32 = vrot.slane %v517_v14, 4 }
 0x146   :  { %v1042_v18 = vpop.f32.mrf.mxu1 }
 0x147   :  { %v519_v38 = vadd.f32 %v518_v32, %v517_v14 }
 0x149   :  { %v520_v47 = vrot.slane %v519_v38, 2 }
 0x14b   :  { %v288_v21 = vpop.f32.mrf.mxu2  ;;  %v521_v1 = vadd.f32 %v520_v47, %v519_v38 }
 0x14c   :  { %v291_v19 = vpop.f32.mrf.mxu3  ;;  %v386_v23 = vmax.f32 %v288_v21, 0.0 }
 0x14d   :  { %v387_v24 = vmax.f32 %v291_v19, 0.0 }
 0x14e   :  { %v373_v27 = vpop.f32.mrf.mxu1  ;;  %v498_v29 = vmul.f32 %v437_v44, %v386_v23  ;;  %v644_v3 = vmul.f32 %v594_v16, %v386_v23 }
 0x14f   :  { %v499_v30 = vmul.f32 %v442_v46, %v387_v24  ;;  %v640_v46 = vmul.f32 %v578_v17, %v382_v58  ;;  %v645_v9 = vmul.f32 %v598_v41, %v387_v24  ;;  %v395_v12 = vmax.f32 %v373_v27, 0.0  ;;  %v634_v27 = vpop.permute.xlu0 %633 }
 0x150   :  { %v524_v34 = vsel %vm510_vm3, %v498_v29, 0.0  ;;  %v522_v17 = vrot.slane %v521_v1, 1  ;;  %v669_v19 = vsel %vm510_vm3, %v644_v3, 0.0  ;;  %v643_v24 = vmul.f32 %v590_v25, %v385_v8 }
 0x151   :  { %v525_v35 = vsel %vm510_vm3, %v499_v30, 0.0  ;;  %v656_v0 = vsel %vm510_vm3, %v640_v46, 0.0  ;;  %v670_v23 = vsel %vm510_vm3, %v645_v9, 0.0  ;;  %v507_v62 = vmul.f32 %v1035_v10, %v395_v12 }
 0x152   :  { %v526_v42 = vadd.f32 %v525_v35, %v524_v34  ;;  %v658_v14 = vadd.f32 %v657_v7, %v656_v0  ;;  %v523_v35 = vadd.f32 %v522_v17, %v521_v1  ;;  %v618_v0 = vpop.permute.xlu1 %617 }
 0x154   :  { %v294_v26 = vpop.f32.mrf.mxu3  ;;  %v660_v38 = vadd.f32 %v659_v60, %v658_v14 }
 0x155   :  { %v388_v28 = vmax.f32 %v294_v26, 0.0  ;;  %v653_v26 = vmul.f32 %v630_v48, %v395_v12 }
 0x156   :  { %v376_v43 = vpop.f32.mrf.mxu1 }
 0x157   :  { %v500_v33 = vmul.f32 %v447_v52, %v388_v28  ;;  %v646_v21 = vmul.f32 %v602_v59, %v388_v28  ;;  %v396_v29 = vmax.f32 %v376_v43, 0.0  ;;  %v696_v6 = vsel %vm510_vm3, %v653_v26, 0.0 }
 0x159   :  { %v527_v39 = vsel %vm510_vm3, %v500_v33, 0.0  ;;  %v508_v8 = vmul.f32 %v1018_v57, %v396_v29  ;;  %v654_v10 = vmul.f32 %v634_v27, %v396_v29 }
 0x15a   :  { %v528_v44 = vadd.f32 %v527_v39, %v526_v42  ;;  %v551_v39 = vsel %vm510_vm3, %v507_v62, 0.0 }
 0x15b   :  { %v553_v47 = vsel %vm510_vm3, %v508_v8, 0.0 }
 0x15c   :  { %v297_v37 = vpop.f32.mrf.mxu3 }
 0x15d   :  { %v389_v40 = vmax.f32 %v297_v37, 0.0  ;;  %v672_v37 = vsel %vm510_vm3, %v646_v21, 0.0 }
 0x15e   :  { %v379_v16 = vpop.f32.mrf.mxu1 }
 0x15f   :  { %v501_v45 = vmul.f32 %v452_v54, %v389_v40  ;;  %v394_v54 = vmax.f32 %v1042_v18, 0.0  ;;  %v647_v20 = vmul.f32 %v606_v4, %v389_v40  ;;  %v397_v33 = vmax.f32 %v379_v16, 0.0  ;;  %v638_v40 = vpop.permute.xlu2 %637 }
 0x161   :  { %v529_v50 = vsel %vm510_vm3, %v501_v45, 0.0  ;;  %v652_v5 = vmul.f32 %v626_v36, %v394_v54  ;;  %v506_v30 = vmul.f32 %v1027_v2, %v394_v54  ;;  %v671_v36 = vadd.f32 %v670_v23, %v669_v19 }
 0x162   :  { %v530_v52 = vadd.f32 %v529_v50, %v528_v44  ;;  %v674_v2 = vsel %vm510_vm3, %v647_v20, 0.0  ;;  %v509_v43 = vmul.f32 %v1040_v15, %v397_v33  ;;  %v655_v45 = vmul.f32 %v638_v40, %v397_v33 }
 0x163   :  { %v695_v32 = vsel %vm510_vm3, %v652_v5, 0.0  ;;  %v673_v41 = vadd.f32 %v672_v37, %v671_v36  ;;  %v661_v44 = vsel %vm510_vm3, %v643_v24, 0.0  ;;  %v550_v57 = vsel %vm510_vm3, %v506_v30, 0.0 }
 0x164   :  { %v531_v55 = vrot.slane %v530_v52, 4  ;;  %v1052_v63 = vpop.f32.mrf.mxu3  ;;  %v697_v46 = vadd.f32 %v696_v6, %v695_v32  ;;  %v698_v50 = vsel %vm510_vm3, %v654_v10, 0.0  ;;  %v552_v51 = vadd.f32 %v551_v39, %v550_v57 }
 0x165   :  { %v675_v48 = vadd.f32 %v674_v2, %v673_v41  ;;  %v555_v1 = vsel %vm510_vm3, %v509_v43, 0.0  ;;  %v700_v3 = vsel %vm510_vm3, %v655_v45, 0.0  ;;  %v390_v15 = vmax.f32 %v1052_v63, 0.0 }
 0x166   :  { %v532_v58 = vadd.f32 %v531_v55, %v530_v52  ;;  %v662_v55 = vadd.f32 %v661_v44, %v660_v38  ;;  %v554_v7 = vadd.f32 %v553_v47, %v552_v51  ;;  %v699_v54 = vadd.f32 %v698_v50, %v697_v46 }
 0x167   :  { %v502_v14 = vmul.f32 %v1012_v49, %v390_v15  ;;  %v648_v17 = vmul.f32 %v1044_v22, %v390_v15 }
 0x168   :  { %v533_v13 = vrot.slane %v532_v58, 2  ;;  %v556_v11 = vadd.f32 %v555_v1, %v554_v7  ;;  %v701_v12 = vadd.f32 %v700_v3, %v699_v54 }
 0x16a   :  { %v534_v18 = vadd.f32 %v533_v13, %v532_v58  ;;  %v676_v58 = vrot.slane %v675_v48, 4  ;;  %v663_v13 = vrot.slane %v662_v55, 4  ;;  %v557_v16 = vrot.slane %v556_v11, 4 }
 0x16b   :  { %v702_v23 = vrot.slane %v701_v12, 4 }
 0x16c   :  { %v535_v28 = vrot.slane %v534_v18, 1  ;;  %v332_v34 = vpop.f32.mrf.mxu3  ;;  %v677_v63 = vadd.f32 %v676_v58, %v675_v48  ;;  %v558_v30 = vadd.f32 %v557_v16, %v556_v11 }
 0x16d   :  { %v391_v52 = vmax.f32 %v332_v34, 0.0  ;;  %v703_v32 = vadd.f32 %v702_v23, %v701_v12 }
 0x16e   :  { %v536_v25 = vadd.f32 %v535_v28, %v534_v18  ;;  %v664_v18 = vadd.f32 %v663_v13, %v662_v55  ;;  %v678_v62 = vrot.slane %v677_v63, 2  ;;  %v559_v38 = vrot.slane %v558_v30, 2 }
 0x16f   :  { %v503_v59 = vmul.f32 %v1016_v56, %v391_v52  ;;  %v649_v5 = vmul.f32 %v1046_v31, %v391_v52  ;;  %v537_v56 = vsel %vm510_vm3, %v502_v14, 0.0  ;;  %v682_v31 = vsel %vm510_vm3, %v648_v17, 0.0 }
 0x170   :  { %v1073_v42 = vsel %vm567_vm4, %v536_v25, %v523_v35  ;;  %v665_v36 = vrot.slane %v664_v18, 2  ;;  %v679_v10 = vadd.f32 %v678_v62, %v677_v63  ;;  %v704_v39 = vrot.slane %v703_v32, 2 }
 0x171   :  { %v538_v26 = vsel %vm510_vm3, %v503_v59, 0.0  ;;  %v683_v29 = vsel %vm510_vm3, %v649_v5, 0.0 }
 0x172   :  { %v539_v20 = vadd.f32 %v538_v26, %v537_v56  ;;  %v684_v27 = vadd.f32 %v683_v29, %v682_v31  ;;  %v666_v41 = vadd.f32 %v665_v36, %v664_v18  ;;  %v680_v44 = vrot.slane %v679_v10, 1 }
 0x173   :  { %v705_v46 = vadd.f32 %v704_v39, %v703_v32 }
 0x174   :  { %v335_v4 = vpop.f32.mrf.mxu3  ;;  %v667_v48 = vrot.slane %v666_v41, 1  ;;  %v681_v52 = vadd.f32 %v680_v44, %v679_v10 }
 0x175   :  { %v392_v9 = vmax.f32 %v335_v4, 0.0 }
 0x176   :  { %v668_v15 = vadd.f32 %v667_v48, %v666_v41 }
 0x177   :  { %v504_v19 = vmul.f32 %v1022_v61, %v392_v9  ;;  %v650_v21 = vmul.f32 %v618_v0, %v392_v9  ;;  %v622_v61 = vpop.permute.xlu1 %621  ;;  %v706_v0 = vrot.slane %v705_v46, 1 }
 0x178   :  { %v712_v54 = vsel %vm567_vm4, %v681_v52, %v668_v15 }
 0x179   :  { %v540_v49 = vsel %vm510_vm3, %v504_v19, 0.0  ;;  %v685_v22 = vsel %vm510_vm3, %v650_v21, 0.0  ;;  %v707_v58 = vadd.f32 %v706_v0, %v705_v46 }
 0x17a   :  { %v541_v34 = vadd.f32 %v540_v49, %v539_v20  ;;  %v686_v35 = vadd.f32 %v685_v22, %v684_v27 }
 0x17c   :  { %v338_v24 = vpop.f32.mrf.mxu3 }
 0x17d   :  { %v393_v60 = vmax.f32 %v338_v24, 0.0 }
 0x17f   :  { %v505_v28 = vmul.f32 %v1014_v53, %v393_v60  ;;  %v651_v33 = vmul.f32 %v622_v61, %v393_v60  ;;  %v560_v53 = vadd.f32 %v559_v38, %v558_v30 }
 0x181   :  { %v542_v37 = vsel %vm510_vm3, %v505_v28, 0.0  ;;  %v687_v6 = vsel %vm510_vm3, %v651_v33, 0.0  ;;  %v561_v55 = vrot.slane %v560_v53, 1 }
 0x182   :  { %v543_v8 = vadd.f32 %v542_v37, %v541_v34  ;;  %v688_v25 = vadd.f32 %v687_v6, %v686_v35 }
 0x183   :  { %v562_v9 = vadd.f32 %v561_v55, %v560_v53 }
 0x184   :  { %v544_v2 = vrot.slane %v543_v8, 4  ;;  %v689_v40 = vrot.slane %v688_v25, 4 }
 0x186   :  { %v545_v43 = vadd.f32 %v544_v2, %v543_v8  ;;  %v690_v45 = vadd.f32 %v689_v40, %v688_v25 }
 0x188   :  { %v546_v57 = vrot.slane %v545_v43, 2  ;;  %v691_v47 = vrot.slane %v690_v45, 2 }
 0x18a   :  { %v547_v50 = vadd.f32 %v546_v57, %v545_v43  ;;  %v692_v51 = vadd.f32 %v691_v47, %v690_v45 }
 0x18c   :  { %v548_v1 = vrot.slane %v547_v50, 1  ;;  %v693_v3 = vrot.slane %v692_v51, 1 }
 0x18e   :  { %v549_v4 = vadd.f32 %v548_v1, %v547_v50  ;;  %v694_v7 = vadd.f32 %v693_v3, %v692_v51 }
 0x190   :  { %v570_v11 = vsel %vm569_vm5, %v549_v4, %v1073_v42  ;;  %v713_v12 = vsel %vm569_vm5, %v694_v7, %v712_v54 }
 0x191   :  { %v572_v59 = vsel %vm571_vm6, %v562_v9, %v570_v11  ;;  %v714_v5 = vsel %vm571_vm6, %v707_v58, %v713_v12 }
 0x192   :  { %575 = vst.msk [vmem:[%s1110_s5] sm:$0xf] %vm574_vm7, %v572_v59 }
 0x193   :  { %755 = vst.msk [vmem:[%s1110_s5 + $0x4] sm:$0xf] %vm574_vm7, %v714_v5 }

</bundles_post_ra>
